<compile_context>
chip_gen: v5e
topology: v5e:2x2
jax: 0.10.0
libtpu: 0.0.40
codegen_flags: <defaults>
</compile_context>

<pallas_src>
import jax
import jax.numpy as jnp
from jax.experimental import pallas as pl
from jax.experimental.pallas import tpu as pltpu

_SUBLANE = 8
_LANE = 128
# Max elements per block: 512K f32 elements = 2 MiB per buffer.  With input +
# output each double-buffered that is ~8 MiB of VMEM, comfortably inside the
# scoped default on v5e/v6e (128 MiB physical) and v7x (64 MiB physical).
_MAX_BLOCK_ELEMS = 512 * 1024


def _mish_kernel(x_ref, o_ref):
    """Elementwise Mish on one (block_rows, cols) lane-dense tile."""
    x = x_ref[...].astype(jnp.float32)
    # Numerically stable softplus: max(x, 0) + log1p(exp(-|x|)).
    # Matches PyTorch's nn.Softplus (beta=1, threshold=20 linear regime) to
    # within f32 rounding.
    sp = jnp.maximum(x, 0.0) + jnp.log1p(jnp.exp(-jnp.abs(x)))
    o_ref[...] = (x * jnp.tanh(sp)).astype(o_ref.dtype)


def _choose_layout(total):
    """Pick a lane-dense (rows, cols) layout and a row-block size.

    cols is the widest multiple of 128 that still leaves >= 8 full rows of real
    data (so every store is an unmasked full-width vst); block_rows is a
    multiple of 8 capped by the VMEM budget.
    """
    cols = _LANE
    for c in (1024, 512, 256):
        if total >= c * _SUBLANE:
            cols = c
            break
    rows = pl.cdiv(total, cols)
    max_block_rows = max(_SUBLANE,
                         (_MAX_BLOCK_ELEMS // cols) // _SUBLANE * _SUBLANE)
    block_rows = min(max_block_rows, pl.cdiv(rows, _SUBLANE) * _SUBLANE)
    padded_rows = pl.cdiv(rows, block_rows) * block_rows
    return cols, block_rows, padded_rows


def mish(x):
    """Mish forward: x * tanh(softplus(x)).  Works for any input shape."""
    orig_shape = x.shape
    total = x.size
    cols, block_rows, padded_rows = _choose_layout(total)

    # Wrapper-side layout plumbing only (no compute hoisted out of the kernel):
    # flatten + pad to a (padded_rows, cols) lane-dense slab.
    xf = jnp.ravel(x)
    pad = padded_rows * cols - total
    if pad:
        xf = jnp.pad(xf, (0, pad))
    x2 = xf.reshape(padded_rows, cols)

    grid = (padded_rows // block_rows,)
    out2 = pl.pallas_call(
        _mish_kernel,
        out_shape=jax.ShapeDtypeStruct((padded_rows, cols), x.dtype),
        grid=grid,
        in_specs=[pl.BlockSpec((block_rows, cols), lambda i: (i, 0))],
        out_specs=pl.BlockSpec((block_rows, cols), lambda i: (i, 0)),
        compiler_params=pltpu.CompilerParams(
            dimension_semantics=("parallel",)),
    )(x2)

    out = out2.reshape(-1)
    if pad:
        out = out[:total]
    return out.reshape(orig_shape)


if __name__ == "__main__":
    # Small deterministic example: (batch=2, channels=4, 16x16 spatial).
    key = jax.random.PRNGKey(0)
    x = 3.0 * jax.random.normal(key, (2, 4, 16, 16), dtype=jnp.float32)

    out = jax.block_until_ready(mish(x))

    # Pure-JAX reference: x * tanh(softplus(x)).
    ref = x * jnp.tanh(jax.nn.softplus(x))

    assert out.shape == x.shape and out.dtype == x.dtype
    assert jnp.allclose(out, ref, rtol=1e-5, atol=1e-5)

    print("KERNEL_OK")
</pallas_src>

<mosaic_0001>
module attributes {stable_mosaic.version = 11 : i64} {
  func.func @_mish_kernel(%arg0: i32, %arg1: memref<8x256xf32, #tpu.memory_space<vmem>>, %arg2: memref<8x256xf32, #tpu.memory_space<vmem>>) attributes {dimension_semantics = [#tpu.dimension_semantics<parallel>], iteration_bounds = array<i64: 1>, scalar_prefetch = 0 : i64, scratch_operands = 0 : i64, tpu.core_type = #tpu.core_type<tc>, window_params = [{transform_indices = @transform_0, window_bounds = array<i64: 8, 256>}, {transform_indices = @transform_1, window_bounds = array<i64: 8, 256>}]} {
    %c0 = arith.constant 0 : index
    %c0_0 = arith.constant 0 : index
    %0 = vector.load %arg1[%c0, %c0_0] : memref<8x256xf32, #tpu.memory_space<vmem>>, vector<8x256xf32>
    %cst = arith.constant 0.000000e+00 : f32
    %1 = vector.broadcast %cst : f32 to vector<8x256xf32>
    %2 = arith.maximumf %0, %1 : vector<8x256xf32>
    %3 = math.absf %0 : vector<8x256xf32>
    %cst_1 = arith.constant 0.000000e+00 : f32
    %4 = vector.broadcast %cst_1 : f32 to vector<8x256xf32>
    %5 = arith.subf %4, %3 : vector<8x256xf32>
    %6 = math.exp %5 : vector<8x256xf32>
    %7 = math.log1p %6 : vector<8x256xf32>
    %8 = arith.addf %2, %7 : vector<8x256xf32>
    %9 = math.tanh %8 : vector<8x256xf32>
    %10 = arith.mulf %0, %9 : vector<8x256xf32>
    %c0_2 = arith.constant 0 : index
    %c0_3 = arith.constant 0 : index
    %11 = vector.load %arg2[%c0_2, %c0_3] : memref<8x256xf32, #tpu.memory_space<vmem>>, vector<8x256xf32>
    tpu.vector_store %arg2[%c0_2, %c0_3], %10 {strides = array<i32>} : memref<8x256xf32, #tpu.memory_space<vmem>>, vector<8x256xf32>,
    return
  }
  func.func @transform_0(%arg0: i32) -> (i32, i32) {
    %c0_i32 = arith.constant 0 : i32
    %c0_i32_0 = arith.constant 0 : i32
    return %arg0, %c0_i32 : i32, i32
  }
  func.func @transform_1(%arg0: i32) -> (i32, i32) {
    %c0_i32 = arith.constant 0 : i32
    %c0_i32_0 = arith.constant 0 : i32
    return %arg0, %c0_i32 : i32, i32
  }
}

</mosaic_0001>

<bundles_post_ra>
// kernel: tpu_custom_call.1
= control target key start
LH: loop header
LB: loop body
LE: loop exit
PB: predicated region body
PF: predicated region fallthrough
CT: control target
= control target key end

     0   :  { %6 = vsyncpa [#allocation3], 0  ;;  %s162_s0 = inlined_call_operand.hbm [shape: f32[8,256], index: 0, kind: input, shape index: {}]   ;;  %s163_s1 = inlined_call_operand.hbm [shape: f32[8,256], index: 1, kind: output, shape index: {}]  }
   0x1   :  { %7 = vsyncpa [#allocation4], 0  ;;  %s13_s8 = sshll.u32 %s162_s0, 4  ;;  %s144_s9 = smov [#allocation2]   ;;  %s14_s8 = int_to_ptr.hbm [resolvable:$true] %s13_s8 }
   0x2   :  { %s15_s10 = sshll.u32 %s144_s9, 4  ;;  %s16_s10 = int_to_ptr.vmem [resolvable:$true] %s15_s10 }
   0x3   :  { %18 = dma.hbm_to_vmem [thread:$0]  %s14_s8, 256, %s16_s10, [#allocation3]  }
   0x4   :  { %140 = dma.done.wait [#allocation3], 256  }
   0x5   :  { %141 = vsyncadd [#allocation3], 4294967040  ;;  %v23_v0 = vld [vmem:[#allocation2] sm:$0xff]  ;;  %v24_v1 = vld [vmem:[#allocation2 + $0x8] sm:$0xff]  ;;  %s145_s0 = smov [#allocation5]   ;;  %s68_s14 = sshll.u32 %s163_s1, 4  ;;  %s69_s14 = int_to_ptr.hbm [resolvable:$true] %s68_s14 }
   0x6   :  { %v27_v2 = vand.u32 2147483647, %v23_v0  ;;  %v28_v3 = vand.u32 2147483647, %v24_v1  ;;  %v25_v20 = vmax.f32 %v23_v0, 0.0  ;;  %v26_v24 = vmax.f32 %v24_v1, 0.0 }
   0x7   :  { %s66_s11 = sshll.u32 %s145_s0, 4  ;;  %s67_s11 = int_to_ptr.vmem [resolvable:$true] %s66_s11 }
   0x8   :  { %v29_v4 = vsub.f32 0.0, %v27_v2  ;;  %v30_v5 = vsub.f32 0.0, %v28_v3 }
   0xa   :  { %v31_v6 = vmul.f32 1.442695, %v29_v4  ;;  %v33_v7 = vmul.f32 1.442695, %v30_v5 }
   0xc   :  { %80 = vpow2.f32 %v31_v6 }
   0xd   :  { %82 = vpow2.f32 %v33_v7 }
  0x12   :  { %v81_v8 = vpop.eup %80 }
  0x13   :  { %v83_v9 = vpop.eup %82  ;;  %v35_v10 = vadd.f32 1.0, %v81_v8  ;;  %v38_v11 = vmul.f32 -0.5, %v81_v8  ;;  %v41_v15 = vand.u32 2147483647, %v81_v8 }
  0x14   :  { %v44_v12 = vadd.f32 1.0, %v83_v9  ;;  %v47_v13 = vmul.f32 -0.5, %v83_v9  ;;  %v50_v17 = vand.u32 2147483647, %v83_v9 }
  0x15   :  { %84 = vlog2.f32 %v35_v10  ;;  %v39_v14 = vadd.f32 1.0, %v38_v11  ;;  %vm42_vm0 = vcmp.lt.f32.partialorder %v41_v15, 0.0004427343 }
  0x16   :  { %86 = vlog2.f32 %v44_v12  ;;  %v48_v16 = vadd.f32 1.0, %v47_v13  ;;  %vm51_vm1 = vcmp.lt.f32.partialorder %v50_v17, 0.0004427343 }
  0x17   :  { %v40_v18 = vmul.f32 %v81_v8, %v39_v14 }
  0x18   :  { %v49_v21 = vmul.f32 %v83_v9, %v48_v16 }
  0x1b   :  { %v85_v19 = vpop.eup %84 }
  0x1c   :  { %v87_v22 = vpop.eup %86  ;;  %v37_v23 = vmul.f32 0.6931472, %v85_v19 }
  0x1d   :  { %v46_v25 = vmul.f32 0.6931472, %v87_v22 }
  0x1e   :  { %v43_v26 = vsel %vm42_vm0, %v40_v18, %v37_v23 }
  0x1f   :  { %v53_v27 = vadd.f32 %v43_v26, %v25_v20  ;;  %v52_v28 = vsel %vm51_vm1, %v49_v21, %v46_v25 }
  0x20   :  { %v54_v29 = vadd.f32 %v52_v28, %v26_v24 }
  0x21   :  { %88 = vtanh.f32 %v53_v27 }
  0x22   :  { %90 = vtanh.f32 %v54_v29 }
  0x27   :  { %v89_v30 = vpop.eup %88 }
  0x28   :  { %v91_v31 = vpop.eup %90  ;;  %v57_v32 = vmul.f32 %v89_v30, %v23_v0 }
  0x29   :  { %v58_v33 = vmul.f32 %v91_v31, %v24_v1 }
  0x2a   :  { %59 = vst [vmem:[#allocation5] sm:$0xff] %v57_v32 }
  0x2b   :  { %60 = vst [vmem:[#allocation5 + $0x8] sm:$0xff] %v58_v33 }
  0x2c   :  { %71 = dma.vmem_to_hbm [thread:$0]  %s67_s11, 256, %s69_s14, [#allocation4]  }
  0x2d   :  { %142 = dma.done.wait [#allocation4], 256  }
  0x2e   :  { %143 = vsyncadd [#allocation4], 4294967040 }
  0x2f   :  { %76 = vsyncpa [#allocation3], 1 }
  0x30   :  { %77 = vsyncpa [#allocation4], 1 }

</bundles_post_ra>
